<compile_context>
chip_gen: v5e
topology: v5e:2x2
jax: 0.10.0
libtpu: 0.0.40
codegen_flags: <defaults>
</compile_context>

<pallas_src>
import jax
import jax.numpy as jnp
from jax.experimental import pallas as pl
from jax.experimental.pallas import tpu as pltpu


_COLS = 1024                           # lane-dense last dim (8 full vregs wide)
_TARGET_BLOCK_BYTES = 8 * 1024 * 1024  # ~8 MiB/block; 4x resident = 32 MiB, fits all gens


def _swish_kernel(x_ref, o_ref):
    xf = x_ref[...].astype(jnp.float32)
    # sigmoid(x) = 0.5 * (tanh(x/2) + 1): one EUP op per element (vs exp + rcp),
    # exact, and no inf intermediate for x << 0. VPU mul/add are free slack in a
    # DMA-bound kernel.
    sig = 0.5 * (jnp.tanh(0.5 * xf) + 1.0)
    o_ref[...] = (xf * sig).astype(o_ref.dtype)


def swish(x):
    """Elementwise Swish (SiLU) via a Pallas TPU kernel.

    The input is flattened and viewed as (rows, 1024) so the last dim maps
    densely onto the 128-wide lane axis (unmasked vst, few DMA descriptors).
    Row tiles come from an ~8 MiB byte budget, rounded to the sublane pack
    (8 for f32, 16 for bf16, 32 for int8). The ragged last row-block (if any)
    is handled by Pallas' boundary masking — no row padding. A single small
    pad to a multiple of 1024 elements is only applied when n % 1024 != 0.
    """
    orig_shape = x.shape
    n = x.size
    itemsize = jnp.dtype(x.dtype).itemsize
    sublane = max(8, 32 // itemsize)  # sublane pack per dtype width

    cols = _COLS
    flat = x.reshape(-1)
    if n % cols == 0:
        needs_trim = False
        rows = n // cols
    else:
        needs_trim = True
        n_padded = pl.cdiv(n, cols) * cols
        flat = jnp.pad(flat, (0, n_padded - n))  # swish(0) == 0, harmless
        rows = n_padded // cols
    x2d = flat.reshape(rows, cols)

    # Row tile from the byte budget, rounded to the sublane pack.
    tr = max(sublane, _TARGET_BLOCK_BYTES // (cols * itemsize))
    tr = (tr // sublane) * sublane
    if rows >= 2 * sublane:
        # Ensure at least 2 grid steps so v7x's 2 TensorCores both stream
        # (neutral on single-TC v5e/v6e).
        half_rows = ((pl.cdiv(rows, 2) + sublane - 1) // sublane) * sublane
        tr = min(tr, half_rows)
    else:
        # Tiny inputs: one block equal to the full row extent (satisfies the
        # "divisible by 8 OR equal full dim" block-shape rule).
        tr = min(tr, rows)

    grid = (pl.cdiv(rows, tr),)

    out2d = pl.pallas_call(
        _swish_kernel,
        out_shape=jax.ShapeDtypeStruct((rows, cols), x.dtype),
        grid_spec=pltpu.PrefetchScalarGridSpec(
            num_scalar_prefetch=0,
            grid=grid,
            in_specs=[pl.BlockSpec((tr, cols), lambda i: (i, 0))],
            out_specs=pl.BlockSpec((tr, cols), lambda i: (i, 0)),
        ),
        compiler_params=pltpu.CompilerParams(
            # parallel grid axis lets v7x shard the stream across its 2 TCs;
            # neutral on v5e/v6e.
            dimension_semantics=("parallel",),
            # Load-bearing on v5e (16 MiB scoped default): 4 x 8 MiB resident
            # buffers + internal scratch. Stays well under v7x's 64 MiB VMEM.
            vmem_limit_bytes=48 * 1024 * 1024,
        ),
        # TODO(synk): consider input_output_aliases={0: 0} when called from a
        # jit with donated activations to drop the extra output allocation.
    )(x2d)

    if needs_trim:
        return out2d.reshape(-1)[:n].reshape(orig_shape)
    return out2d.reshape(orig_shape)


if __name__ == "__main__":
    key = jax.random.PRNGKey(0)

    # Small shapes consistent with the module: (batch, block_size, embeddings_dims)
    batch, seq, hidden = 2, 8, 32
    x = jax.random.normal(key, (batch, seq, hidden), dtype=jnp.float32)

    out = jax.block_until_ready(swish(x))
    ref = x * jax.nn.sigmoid(x)
    assert out.shape == x.shape and out.dtype == x.dtype
    assert jnp.allclose(out, ref, atol=1e-4, rtol=1e-4), float(
        jnp.max(jnp.abs(out - ref))
    )

    # Second case exercising the no-pad fast path (size divisible by 1024).
    x2 = jax.random.normal(jax.random.PRNGKey(1), (2, 8, 128), dtype=jnp.float32)
    out2 = jax.block_until_ready(swish(x2))
    ref2 = x2 * jax.nn.sigmoid(x2)
    assert out2.shape == x2.shape and out2.dtype == x2.dtype
    assert jnp.allclose(out2, ref2, atol=1e-4, rtol=1e-4), float(
        jnp.max(jnp.abs(out2 - ref2))
    )

    print("KERNEL_OK")
</pallas_src>

<mosaic_0001>
module attributes {stable_mosaic.version = 11 : i64} {
  func.func @_swish_kernel(%arg0: i32, %arg1: memref<1x1024xf32, #tpu.memory_space<vmem>>, %arg2: memref<1x1024xf32, #tpu.memory_space<vmem>>) attributes {dimension_semantics = [#tpu.dimension_semantics<parallel>], iteration_bounds = array<i64: 1>, scalar_prefetch = 0 : i64, scratch_operands = 0 : i64, tpu.core_type = #tpu.core_type<tc>, window_params = [{transform_indices = @transform_0, window_bounds = array<i64: 1, 1024>}, {transform_indices = @transform_1, window_bounds = array<i64: 1, 1024>}]} {
    %c0 = arith.constant 0 : index
    %c0_0 = arith.constant 0 : index
    %0 = vector.load %arg1[%c0, %c0_0] : memref<1x1024xf32, #tpu.memory_space<vmem>>, vector<1x1024xf32>
    %cst = arith.constant 5.000000e-01 : f32
    %1 = vector.broadcast %cst : f32 to vector<1x1024xf32>
    %2 = arith.mulf %1, %0 : vector<1x1024xf32>
    %3 = math.tanh %2 : vector<1x1024xf32>
    %cst_1 = arith.constant 1.000000e+00 : f32
    %4 = vector.broadcast %cst_1 : f32 to vector<1x1024xf32>
    %5 = arith.addf %3, %4 : vector<1x1024xf32>
    %cst_2 = arith.constant 5.000000e-01 : f32
    %6 = vector.broadcast %cst_2 : f32 to vector<1x1024xf32>
    %7 = arith.mulf %6, %5 : vector<1x1024xf32>
    %8 = arith.mulf %0, %7 : vector<1x1024xf32>
    %c0_3 = arith.constant 0 : index
    %c0_4 = arith.constant 0 : index
    %9 = vector.load %arg2[%c0_3, %c0_4] : memref<1x1024xf32, #tpu.memory_space<vmem>>, vector<1x1024xf32>
    tpu.vector_store %arg2[%c0_3, %c0_4], %8 {strides = array<i32>} : memref<1x1024xf32, #tpu.memory_space<vmem>>, vector<1x1024xf32>,
    return
  }
  func.func @transform_0(%arg0: i32) -> (i32, i32) {
    %c0_i32 = arith.constant 0 : i32
    %c0_i32_0 = arith.constant 0 : i32
    return %arg0, %c0_i32 : i32, i32
  }
  func.func @transform_1(%arg0: i32) -> (i32, i32) {
    %c0_i32 = arith.constant 0 : i32
    %c0_i32_0 = arith.constant 0 : i32
    return %arg0, %c0_i32 : i32, i32
  }
}

</mosaic_0001>

<bundles_post_ra>
// kernel: tpu_custom_call.1
= control target key start
LH: loop header
LB: loop body
LE: loop exit
PB: predicated region body
PF: predicated region fallthrough
CT: control target
= control target key end

     0   :  { %6 = vsyncpa [#allocation3], 0  ;;  %s121_s0 = inlined_call_operand.hbm [shape: f32[1,1024], index: 0, kind: input, shape index: {}]   ;;  %s122_s1 = inlined_call_operand.hbm [shape: f32[1,1024], index: 1, kind: output, shape index: {}]  }
   0x1   :  { %7 = vsyncpa [#allocation4], 0  ;;  %s13_s8 = sshll.u32 %s121_s0, 4  ;;  %s103_s9 = smov [#allocation2]   ;;  %s14_s8 = int_to_ptr.hbm [resolvable:$true] %s13_s8 }
   0x2   :  { %s15_s10 = sshll.u32 %s103_s9, 4  ;;  %s16_s10 = int_to_ptr.vmem [resolvable:$true] %s15_s10 }
   0x3   :  { %18 = dma.hbm_to_vmem [thread:$0]  %s14_s8, 128, %s16_s10, [#allocation3]  }
   0x4   :  { %99 = dma.done.wait [#allocation3], 128  }
   0x5   :  { %100 = vsyncadd [#allocation3], 4294967168  ;;  %v23_v0 = vld [vmem:[#allocation2] sm:$0xff]  ;;  %s104_s11 = smov [#allocation5]   ;;  %s37_s15 = sshll.u32 %s122_s1, 4  ;;  %s38_s15 = int_to_ptr.hbm [resolvable:$true] %s37_s15 }
   0x6   :  { %v24_v1 = vmul.f32 0.5, %v23_v0  ;;  %s35_s12 = sshll.u32 %s104_s11, 4  ;;  %s36_s12 = int_to_ptr.vmem [resolvable:$true] %s35_s12 }
   0x8   :  { %49 = vtanh.f32 %v24_v1 }
   0xe   :  { %v50_v2 = vpop.eup %49 }
   0xf   :  { %v26_v3 = vadd.f32 1.0, %v50_v2 }
  0x11   :  { %v27_v4 = vmul.f32 0.5, %v26_v3 }
  0x13   :  { %v28_v5 = vmul.f32 %v27_v4, %v23_v0 }
  0x15   :  { %29 = vst [vmem:[#allocation5] sm:$0xff] %v28_v5 }
  0x16   :  { %40 = dma.vmem_to_hbm [thread:$0]  %s36_s12, 128, %s38_s15, [#allocation4]  }
  0x17   :  { %101 = dma.done.wait [#allocation4], 128  }
  0x18   :  { %102 = vsyncadd [#allocation4], 4294967168 }
  0x19   :  { %45 = vsyncpa [#allocation3], 1 }
  0x1a   :  { %46 = vsyncpa [#allocation4], 1 }

</bundles_post_ra>
